<compile_context>
chip_gen: v5e
topology: v5e:2x2
jax: 0.10.0
libtpu: 0.0.40
codegen_flags: <defaults>
</compile_context>

<pallas_src>
import jax
import jax.numpy as jnp
from jax.experimental import pallas as pl
from jax.experimental.pallas import tpu as pltpu

BN_EPS = 1e-5


def _vmem_capacity_bytes():
    """Physical VMEM per core; conservative fallback if the query is missing."""
    try:
        return int(pltpu.get_tpu_info().vmem_capacity_bytes)
    except Exception:
        return 64 * 1024 * 1024      # v7x per-TensorCore VMEM (smallest gen)


def _batchnorm(h, gamma, beta):
    # nn.BatchNorm1d training mode: batch mean, biased batch variance.
    # Single pass: (h - mu) computed once and reused for variance + normalize.
    mu = jnp.mean(h, axis=0, keepdims=True)
    hc = h - mu
    var = jnp.mean(hc * hc, axis=0, keepdims=True)
    return hc * jax.lax.rsqrt(var + BN_EPS) * gamma + beta


# --------------------------------------------------------------------------
# Pass 1: encoder big matmul (K-reduction over IN tiles) + latent epilogue.
# --------------------------------------------------------------------------
def _encode_kernel(x_ref, w1_ref, m1_ref, w2_ref, dw2_ref, pl2_ref, p2z_ref,
                   eps_ref, mean_ref, logvar_ref, z_ref, d2_ref, acc_ref):
    k = pl.program_id(0)

    @pl.when(k == 0)
    def _():
        acc_ref[...] = jnp.zeros_like(acc_ref)

    # In-kernel pathway masking of the streamed weight tile (int8 mask, VPU op
    # hidden under the weight DMA).  Canonical (K, N) layout -> no transpose.
    w1 = w1_ref[...] * m1_ref[...].astype(w1_ref.dtype)
    acc_ref[...] += jnp.dot(x_ref[...].astype(w1.dtype), w1,
                            preferred_element_type=jnp.float32)

    @pl.when(k == pl.num_programs(0) - 1)
    def _():
        p_l2 = pl2_ref[...]          # [e_b1, e_g1, e_be1, d_b2, d_g2, d_be2]
        p_2z = p2z_ref[...]          # [bias, gamma, beta] for fused mean|logvar
        zd = eps_ref.shape[1]

        h = acc_ref[...] + p_l2[0:1, :]
        h = _batchnorm(h, p_l2[1:2, :], p_l2[2:3, :])
        h = jnp.maximum(h, 0.0)                                   # ReLU

        # Fused mean/logvar head: one matmul + one BN on (B, 2*z_dim).
        ml = jnp.dot(h, w2_ref[...], preferred_element_type=jnp.float32)
        ml = ml + p_2z[0:1, :]
        ml = _batchnorm(ml, p_2z[1:2, :], p_2z[2:3, :])
        mean = ml[:, :zd]
        logvar = ml[:, zd:]

        # Reparameterization.
        std = jnp.exp(0.5 * logvar)
        z = eps_ref[...] * std + mean

        # Small decoder layer (z -> L2), so pass 2 only streams the big weight.
        d2 = jnp.dot(z, dw2_ref[...], preferred_element_type=jnp.float32)
        d2 = d2 + p_l2[3:4, :]
        d2 = _batchnorm(d2, p_l2[4:5, :], p_l2[5:6, :])
        d2 = jnp.maximum(d2, 0.0)                                 # ReLU

        mean_ref[...] = mean
        logvar_ref[...] = logvar
        z_ref[...] = z
        d2_ref[...] = d2.astype(d2_ref.dtype)


# --------------------------------------------------------------------------
# Pass 2: decoder big matmul + BN + sigmoid, per (B, tIN) column tile.
# --------------------------------------------------------------------------
def _decode_kernel(d2_ref, w_ref, m_ref, p_ref, recon_ref):
    w = w_ref[...] * m_ref[...].astype(w_ref.dtype)
    r = jnp.dot(d2_ref[...], w, preferred_element_type=jnp.float32)
    p = p_ref[...]                    # [d_b1, d_g1, d_be1] column slab
    r = r + p[0:1, :]
    r = _batchnorm(r, p[1:2, :], p[2:3, :])
    recon_ref[...] = jax.nn.sigmoid(r)


def _pick_tile_in(input_n, level_2_dim, batch, c_bytes, budget_bytes):
    """Largest 128-multiple IN tile that divides input_n and fits the budget."""
    # Per IN column: weight tile + int8 mask tile + streamed x/recon/p rows.
    per_col = level_2_dim * (c_bytes + 1) + batch * (c_bytes + 4) + 3 * 4
    usable = max(budget_bytes // 2, 1)           # leave room for residents/scratch
    max_cols = (usable // (2 * per_col)) // 128 * 128   # 2x: double buffering
    if max_cols < 128:
        return input_n                            # tiny budget: full block is legal
    t = min(max_cols, (input_n // 128) * 128)
    while t >= 128:
        if input_n % t == 0:
            return t
        t -= 128
    return input_n


def prepare_inputs(params, pathway_mask, compute_dtype=jnp.float32):
    """One-time packing into the kernels' canonical layouts.

    In a training loop this belongs in the parameter/optimizer state (keep the
    big weights canonical and in the compute dtype), NOT on the per-step path.
    """
    cdt = jnp.dtype(compute_dtype)
    f32 = jnp.float32
    return {
        # Big streamed operands: canonical (K, N) layout, compute dtype.
        "e_w1": params["e_w1"].T.astype(cdt),             # (IN, L2)
        "d_w1": params["d_w1"].T.astype(cdt),             # (L2, IN)
        "enc_mask": pathway_mask.T.astype(jnp.int8),      # (IN, L2)
        "dec_mask": pathway_mask.astype(jnp.int8),        # (L2, IN)
        # Small resident operands: f32.
        "e_w2": jnp.concatenate([params["e_w2m"], params["e_w2v"]],
                                axis=0).T.astype(f32),    # (L2, 2z) fused head
        "d_w2": params["d_w2"].T.astype(f32),             # (z, L2)
        "p_l2": jnp.concatenate(
            [params["e_b1"], params["e_g1"], params["e_be1"],
             params["d_b2"], params["d_g2"], params["d_be2"]], axis=0),   # (6, L2)
        "p_2z": jnp.concatenate(
            [jnp.concatenate([params["e_b2m"], params["e_b2v"]], axis=1),
             jnp.concatenate([params["e_g2m"], params["e_g2v"]], axis=1),
             jnp.concatenate([params["e_be2m"], params["e_be2v"]], axis=1)],
            axis=0),                                                       # (3, 2z)
        "p_in": jnp.concatenate(
            [params["d_b1"], params["d_g1"], params["d_be1"]], axis=0),   # (3, IN)
    }


def kl_pmvae_genes_forward(x, eps, prep, *, tile_in=None):
    """Pallas forward. x: (B, input_n) f32, eps: (B, z_dim) f32, prep: prepare_inputs()."""
    B, input_n = x.shape
    z_dim = eps.shape[1]
    L2 = prep["e_w1"].shape[1]
    cdt = prep["e_w1"].dtype
    c_bytes = cdt.itemsize

    physical = _vmem_capacity_bytes()
    budget = int(physical * 0.85)     # ~54 MiB on v7x, ~109 MiB on v5e/v6e

    t = tile_in if tile_in is not None else _pick_tile_in(input_n, L2, B, c_bytes, budget)
    if input_n % t != 0:
        raise ValueError(f"tile_in={t} must divide input_n={input_n}")
    if t != input_n and t % 128 != 0:
        raise ValueError("tile_in must be a multiple of 128 (or the full input_n)")
    n_t = input_n // t

    # --- explicit VMEM limits from the real tile footprints (plain ints) ---
    need1 = (2 * (B * t * 4 + t * L2 * (c_bytes + 1))                       # streamed, 2x buf
             + 2 * (L2 * 2 * z_dim * 4 + z_dim * L2 * 4 + 6 * L2 * 4
                    + 3 * 2 * z_dim * 4 + B * z_dim * 4)                    # resident smalls
             + 2 * (3 * B * z_dim * 4 + B * L2 * c_bytes)                   # outputs
             + B * L2 * 4 + (8 << 20))                                      # acc + margin
    need2 = (2 * (B * L2 * c_bytes + L2 * t * (c_bytes + 1)
                  + 3 * t * 4 + B * t * 4) + (8 << 20))
    vmem1 = min(int(physical * 0.9), max(need1, 32 << 20))
    vmem2 = min(int(physical * 0.9), max(need2, 32 << 20))

    ce1 = pl.CostEstimate(
        flops=2 * B * input_n * L2 + 2 * B * L2 * 2 * z_dim + 2 * B * z_dim * L2,
        transcendentals=B * (z_dim + 2 * L2 + 2 * z_dim),
        bytes_accessed=(input_n * L2 * (c_bytes + 1) + B * input_n * 4
                        + B * L2 * c_bytes + 3 * B * z_dim * 4
                        + (L2 * 2 * z_dim + z_dim * L2 + 6 * L2 + 6 * z_dim
                           + B * z_dim) * 4))
    ce2 = pl.CostEstimate(
        flops=2 * B * L2 * input_n,
        transcendentals=B * input_n + input_n,
        bytes_accessed=(L2 * input_n * (c_bytes + 1) + B * L2 * c_bytes
                        + 3 * input_n * 4 + B * input_n * 4))

    # ---- pass 1: encoder K-reduction over IN tiles + latent epilogue ----
    mean, logvar, z, d2 = pl.pallas_call(
        _encode_kernel,
        out_shape=(
            jax.ShapeDtypeStruct((B, z_dim), jnp.float32),
            jax.ShapeDtypeStruct((B, z_dim), jnp.float32),
            jax.ShapeDtypeStruct((B, z_dim), jnp.float32),
            jax.ShapeDtypeStruct((B, L2), cdt),
        ),
        grid_spec=pltpu.PrefetchScalarGridSpec(
            num_scalar_prefetch=0,
            grid=(n_t,),
            in_specs=[
                pl.BlockSpec((B, t), lambda k: (0, k)),              # x
                pl.BlockSpec((t, L2), lambda k: (k, 0)),             # e_w1 (canonical)
                pl.BlockSpec((t, L2), lambda k: (k, 0)),             # enc mask (int8)
                pl.BlockSpec((L2, 2 * z_dim), lambda k: (0, 0)),     # fused head W
                pl.BlockSpec((z_dim, L2), lambda k: (0, 0)),         # d_w2 (canonical)
                pl.BlockSpec((6, L2), lambda k: (0, 0)),             # p_l2 slab
                pl.BlockSpec((3, 2 * z_dim), lambda k: (0, 0)),      # p_2z slab
                pl.BlockSpec((B, z_dim), lambda k: (0, 0)),          # eps
            ],
            out_specs=(
                pl.BlockSpec((B, z_dim), lambda k: (0, 0)),
                pl.BlockSpec((B, z_dim), lambda k: (0, 0)),
                pl.BlockSpec((B, z_dim), lambda k: (0, 0)),
                pl.BlockSpec((B, L2), lambda k: (0, 0)),
            ),
            scratch_shapes=[pltpu.VMEM((B, L2), jnp.float32)],
        ),
        compiler_params=pltpu.CompilerParams(
            dimension_semantics=("arbitrary",), vmem_limit_bytes=vmem1),
        cost_estimate=ce1,
    )(x, prep["e_w1"], prep["enc_mask"], prep["e_w2"], prep["d_w2"],
      prep["p_l2"], prep["p_2z"], eps)

    # ---- pass 2: decoder column tiles (parallel -> v7x megacore) ----
    recon_x = pl.pallas_call(
        _decode_kernel,
        out_shape=jax.ShapeDtypeStruct((B, input_n), jnp.float32),
        grid_spec=pltpu.PrefetchScalarGridSpec(
            num_scalar_prefetch=0,
            grid=(n_t,),
            in_specs=[
                pl.BlockSpec((B, L2), lambda j: (0, 0)),             # d2
                pl.BlockSpec((L2, t), lambda j: (0, j)),             # d_w1 (canonical)
                pl.BlockSpec((L2, t), lambda j: (0, j)),             # dec mask (int8)
                pl.BlockSpec((3, t), lambda j: (0, j)),              # p_in slab
            ],
            out_specs=pl.BlockSpec((B, t), lambda j: (0, j)),
        ),
        compiler_params=pltpu.CompilerParams(
            dimension_semantics=("parallel",), vmem_limit_bytes=vmem2),
        cost_estimate=ce2,
    )(d2, prep["d_w1"], prep["dec_mask"], prep["p_in"])

    return mean, logvar, z, recon_x


def init_params(key, z_dim, input_n, level_2_dim):
    """Deterministic synthetic parameter init (PyTorch-style master shapes)."""
    ks = jax.random.split(key, 8)

    def lin(k, out_f, in_f):
        bound = 1.0 / jnp.sqrt(in_f)
        kw, kb = jax.random.split(k)
        w = jax.random.uniform(kw, (out_f, in_f), jnp.float32, -bound, bound)
        b = jax.random.uniform(kb, (1, out_f), jnp.float32, -bound, bound)
        return w, b

    p = {}
    p["e_w1"], p["e_b1"] = lin(ks[0], level_2_dim, input_n)
    p["e_w2m"], p["e_b2m"] = lin(ks[1], z_dim, level_2_dim)
    p["e_w2v"], p["e_b2v"] = lin(ks[2], z_dim, level_2_dim)
    p["d_w2"], p["d_b2"] = lin(ks[3], level_2_dim, z_dim)
    p["d_w1"], p["d_b1"] = lin(ks[4], input_n, level_2_dim)
    for name, dim in (("e_g1", level_2_dim), ("e_g2m", z_dim), ("e_g2v", z_dim),
                      ("d_g2", level_2_dim), ("d_g1", input_n)):
        p[name] = jnp.ones((1, dim), jnp.float32)
    for name, dim in (("e_be1", level_2_dim), ("e_be2m", z_dim), ("e_be2v", z_dim),
                      ("d_be2", level_2_dim), ("d_be1", input_n)):
        p[name] = jnp.zeros((1, dim), jnp.float32)
    return p


def _reference_forward(x, eps, pathway_mask, params, compute_dtype=jnp.float32):
    """Pure-JAX reference of the PyTorch module (training-mode BN).

    compute_dtype mirrors the kernel's streaming precision for the two big
    matmuls (f32 accumulation everywhere)."""
    cdt = jnp.dtype(compute_dtype)

    def bn(h, g, b):
        mu = jnp.mean(h, axis=0, keepdims=True)
        var = jnp.mean((h - mu) ** 2, axis=0, keepdims=True)
        return (h - mu) / jnp.sqrt(var + BN_EPS) * g + b

    w1 = (params["e_w1"] * pathway_mask).astype(cdt)                      # (L2, IN)
    h = jnp.dot(x.astype(cdt), w1.T, preferred_element_type=jnp.float32) + params["e_b1"]
    h = jnp.maximum(bn(h, params["e_g1"], params["e_be1"]), 0.0)
    mean = bn(h @ params["e_w2m"].T + params["e_b2m"], params["e_g2m"], params["e_be2m"])
    logvar = bn(h @ params["e_w2v"].T + params["e_b2v"], params["e_g2v"], params["e_be2v"])
    z = eps * jnp.exp(0.5 * logvar) + mean
    d2 = jnp.maximum(bn(z @ params["d_w2"].T + params["d_b2"],
                        params["d_g2"], params["d_be2"]), 0.0)
    dw1 = (params["d_w1"] * pathway_mask.T).astype(cdt)                   # (IN, L2)
    r = jnp.dot(d2.astype(cdt), dw1.T, preferred_element_type=jnp.float32) + params["d_b1"]
    recon = jax.nn.sigmoid(bn(r, params["d_g1"], params["d_be1"]))
    return mean, logvar, z, recon


if __name__ == "__main__":
    # Small shapes consistent with the module: batch=8, input_n=256,
    # level_2_dim (= Pathway_Mask.size(0)) = 64, z_dim = 8.
    B, input_n, level_2_dim, z_dim = 8, 256, 64, 8

    root = jax.random.PRNGKey(0)
    k_x, k_eps, k_mask, k_param = jax.random.split(root, 4)

    x = jax.random.uniform(k_x, (B, input_n), jnp.float32)
    eps = jax.random.normal(k_eps, (B, z_dim), jnp.float32)   # reparam noise
    pathway_mask = jax.random.bernoulli(
        k_mask, 0.5, (level_2_dim, input_n)).astype(jnp.float32)
    params = init_params(k_param, z_dim, input_n, level_2_dim)

    # ---- f32 streaming weights, forced IN tiling (grid > 1), tight parity ----
    prep32 = prepare_inputs(params, pathway_mask, jnp.float32)
    mean, logvar, z, recon_x = kl_pmvae_genes_forward(x, eps, prep32, tile_in=128)
    jax.block_until_ready((mean, logvar, z, recon_x))

    assert mean.shape == (B, z_dim) and logvar.shape == (B, z_dim)
    assert z.shape == (B, z_dim) and recon_x.shape == (B, input_n)
    ref = _reference_forward(x, eps, pathway_mask, params, jnp.float32)
    for got, want in zip((mean, logvar, z, recon_x), ref):
        assert bool(jnp.all(jnp.isfinite(got)))
        assert bool(jnp.allclose(got, want, rtol=1e-4, atol=1e-4))

    # ---- bf16 streaming weights, auto tile selection (VMEM-budget driven) ----
    prep16 = prepare_inputs(params, pathway_mask, jnp.bfloat16)
    m16, lv16, z16, rec16 = kl_pmvae_genes_forward(x, eps, prep16)
    jax.block_until_ready((m16, lv16, z16, rec16))

    ref16 = _reference_forward(x, eps, pathway_mask, params, jnp.bfloat16)
    for got, want in zip((m16, lv16, z16, rec16), ref16):
        assert bool(jnp.all(jnp.isfinite(got)))
        assert bool(jnp.allclose(got, want, rtol=5e-3, atol=5e-3))

    print("KERNEL_OK")
</pallas_src>

<mosaic_0001>
module attributes {stable_mosaic.version = 11 : i64} {
  func.func @_encode_kernel(%arg0: i32, %arg1: memref<8x128xf32, #tpu.memory_space<vmem>>, %arg2: memref<128x64xf32, #tpu.memory_space<vmem>>, %arg3: memref<128x64xi8, #tpu.memory_space<vmem>>, %arg4: memref<64x16xf32, #tpu.memory_space<vmem>>, %arg5: memref<8x64xf32, #tpu.memory_space<vmem>>, %arg6: memref<6x64xf32, #tpu.memory_space<vmem>>, %arg7: memref<3x16xf32, #tpu.memory_space<vmem>>, %arg8: memref<8x8xf32, #tpu.memory_space<vmem>>, %arg9: memref<8x8xf32, #tpu.memory_space<vmem>>, %arg10: memref<8x8xf32, #tpu.memory_space<vmem>>, %arg11: memref<8x8xf32, #tpu.memory_space<vmem>>, %arg12: memref<8x64xf32, #tpu.memory_space<vmem>>, %arg13: memref<8x64xf32, #tpu.memory_space<vmem>>) attributes {dimension_semantics = [#tpu.dimension_semantics<arbitrary>], iteration_bounds = array<i64: 2>, scalar_prefetch = 0 : i64, scratch_operands = 1 : i64, tpu.core_type = #tpu.core_type<tc>, window_params = [{transform_indices = @transform_0, window_bounds = array<i64: 8, 128>}, {transform_indices = @transform_1, window_bounds = array<i64: 128, 64>}, {transform_indices = @transform_2, window_bounds = array<i64: 128, 64>}, {pipeline_mode = #tpu.pipeline_mode<synchronous>, transform_indices = @transform_3, window_bounds = array<i64: 64, 16>}, {pipeline_mode = #tpu.pipeline_mode<synchronous>, transform_indices = @transform_4, window_bounds = array<i64: 8, 64>}, {pipeline_mode = #tpu.pipeline_mode<synchronous>, transform_indices = @transform_5, window_bounds = array<i64: 6, 64>}, {pipeline_mode = #tpu.pipeline_mode<synchronous>, transform_indices = @transform_6, window_bounds = array<i64: 3, 16>}, {pipeline_mode = #tpu.pipeline_mode<synchronous>, transform_indices = @transform_7, window_bounds = array<i64: 8, 8>}, {pipeline_mode = #tpu.pipeline_mode<synchronous>, transform_indices = @transform_8, window_bounds = array<i64: 8, 8>}, {pipeline_mode = #tpu.pipeline_mode<synchronous>, transform_indices = @transform_9, window_bounds = array<i64: 8, 8>}, {pipeline_mode = #tpu.pipeline_mode<synchronous>, transform_indices = @transform_10, window_bounds = array<i64: 8, 8>}, {pipeline_mode = #tpu.pipeline_mode<synchronous>, transform_indices = @transform_11, window_bounds = array<i64: 8, 64>}]} {
    %c0_i32 = arith.constant 0 : i32
    %0 = arith.cmpi eq, %arg0, %c0_i32 : i32
    %1 = arith.extui %0 : i1 to i32
    %c0_i32_0 = arith.constant 0 : i32
    %2 = arith.cmpi ne, %1, %c0_i32_0 : i32
    scf.if %2 {
      %cst_11 = arith.constant 0.000000e+00 : f32
      %15 = vector.broadcast %cst_11 : f32 to vector<8x64xf32>
      %c0_12 = arith.constant 0 : index
      %c0_13 = arith.constant 0 : index
      %16 = vector.load %arg13[%c0_12, %c0_13] : memref<8x64xf32, #tpu.memory_space<vmem>>, vector<8x64xf32>
      tpu.vector_store %arg13[%c0_12, %c0_13], %15 {strides = array<i32>} : memref<8x64xf32, #tpu.memory_space<vmem>>, vector<8x64xf32>,
    } else {
    }
    %c0 = arith.constant 0 : index
    %c0_1 = arith.constant 0 : index
    %3 = vector.load %arg2[%c0, %c0_1] : memref<128x64xf32, #tpu.memory_space<vmem>>, vector<128x64xf32>
    %c0_2 = arith.constant 0 : index
    %c0_3 = arith.constant 0 : index
    %4 = vector.load %arg3[%c0_2, %c0_3] : memref<128x64xi8, #tpu.memory_space<vmem>>, vector<128x64xi8>
    %5 = arith.sitofp %4 : vector<128x64xi8> to vector<128x64xf32>
    %6 = arith.mulf %3, %5 : vector<128x64xf32>
    %c0_4 = arith.constant 0 : index
    %c0_5 = arith.constant 0 : index
    %7 = vector.load %arg13[%c0_4, %c0_5] : memref<8x64xf32, #tpu.memory_space<vmem>>, vector<8x64xf32>
    %c0_6 = arith.constant 0 : index
    %c0_7 = arith.constant 0 : index
    %8 = vector.load %arg1[%c0_6, %c0_7] : memref<8x128xf32, #tpu.memory_space<vmem>>, vector<8x128xf32>
    %cst = arith.constant dense<0.000000e+00> : vector<8x64xf32>
    %9 = tpu.matmul %8, %6, %cst {dimension_numbers = #tpu.dot_dimension_numbers<[1], [0], [0], [1], [0, 0, 1, 1], [], []>} : vector<8x128xf32>, vector<128x64xf32>, vector<8x64xf32> -> vector<8x64xf32>
    %10 = arith.addf %7, %9 : vector<8x64xf32>
    %c0_8 = arith.constant 0 : index
    %c0_9 = arith.constant 0 : index
    %11 = vector.load %arg13[%c0_8, %c0_9] : memref<8x64xf32, #tpu.memory_space<vmem>>, vector<8x64xf32>
    tpu.vector_store %arg13[%c0_8, %c0_9], %10 {strides = array<i32>} : memref<8x64xf32, #tpu.memory_space<vmem>>, vector<8x64xf32>,
    %c1_i32 = arith.constant 1 : i32
    %12 = arith.cmpi eq, %arg0, %c1_i32 : i32
    %13 = arith.extui %12 : i1 to i32
    %c0_i32_10 = arith.constant 0 : i32
    %14 = arith.cmpi ne, %13, %c0_i32_10 : i32
    scf.if %14 {
      %c0_11 = arith.constant 0 : index
      %c0_12 = arith.constant 0 : index
      %15 = vector.load %arg6[%c0_11, %c0_12] : memref<6x64xf32, #tpu.memory_space<vmem>>, vector<6x64xf32>
      %c0_13 = arith.constant 0 : index
      %c0_14 = arith.constant 0 : index
      %16 = vector.load %arg7[%c0_13, %c0_14] : memref<3x16xf32, #tpu.memory_space<vmem>>, vector<3x16xf32>
      %c0_15 = arith.constant 0 : index
      %c0_16 = arith.constant 0 : index
      %17 = vector.load %arg13[%c0_15, %c0_16] : memref<8x64xf32, #tpu.memory_space<vmem>>, vector<8x64xf32>
      %18 = vector.extract_strided_slice %15 {offsets = [0, 0], sizes = [1, 64], strides = [1, 1]} : vector<6x64xf32> to vector<1x64xf32>
      %19 = vector.broadcast %18 : vector<1x64xf32> to vector<8x64xf32>
      %20 = arith.addf %17, %19 : vector<8x64xf32>
      %21 = vector.extract_strided_slice %15 {offsets = [1, 0], sizes = [1, 64], strides = [1, 1]} : vector<6x64xf32> to vector<1x64xf32>
      %22 = vector.extract_strided_slice %15 {offsets = [2, 0], sizes = [1, 64], strides = [1, 1]} : vector<6x64xf32> to vector<1x64xf32>
      %cst_17 = arith.constant dense<0.000000e+00> : vector<64xf32>
      %23 = vector.multi_reduction <add>, %20, %cst_17 [0] : vector<8x64xf32> to vector<64xf32>
      %24 = vector.shape_cast %23 : vector<64xf32> to vector<1x64xf32>
      %cst_18 = arith.constant 8.000000e+00 : f32
      %25 = vector.broadcast %cst_18 : f32 to vector<1x64xf32>
      %26 = arith.divf %24, %25 : vector<1x64xf32>
      %27 = vector.broadcast %26 : vector<1x64xf32> to vector<8x64xf32>
      %28 = arith.subf %20, %27 : vector<8x64xf32>
      %29 = arith.mulf %28, %28 : vector<8x64xf32>
      %cst_19 = arith.constant dense<0.000000e+00> : vector<64xf32>
      %30 = vector.multi_reduction <add>, %29, %cst_19 [0] : vector<8x64xf32> to vector<64xf32>
      %31 = vector.shape_cast %30 : vector<64xf32> to vector<1x64xf32>
      %cst_20 = arith.constant 8.000000e+00 : f32
      %32 = vector.broadcast %cst_20 : f32 to vector<1x64xf32>
      %33 = arith.divf %31, %32 : vector<1x64xf32>
      %cst_21 = arith.constant 9.99999974E-6 : f32
      %34 = vector.broadcast %cst_21 : f32 to vector<1x64xf32>
      %35 = arith.addf %33, %34 : vector<1x64xf32>
      %36 = math.rsqrt %35 : vector<1x64xf32>
      %37 = vector.broadcast %36 : vector<1x64xf32> to vector<8x64xf32>
      %38 = arith.mulf %28, %37 : vector<8x64xf32>
      %39 = vector.broadcast %21 : vector<1x64xf32> to vector<8x64xf32>
      %40 = arith.mulf %38, %39 : vector<8x64xf32>
      %41 = vector.broadcast %22 : vector<1x64xf32> to vector<8x64xf32>
      %42 = arith.addf %40, %41 : vector<8x64xf32>
      %cst_22 = arith.constant 0.000000e+00 : f32
      %43 = vector.broadcast %cst_22 : f32 to vector<8x64xf32>
      %44 = arith.maximumf %42, %43 : vector<8x64xf32>
      %c0_23 = arith.constant 0 : index
      %c0_24 = arith.constant 0 : index
      %45 = vector.load %arg4[%c0_23, %c0_24] : memref<64x16xf32, #tpu.memory_space<vmem>>, vector<64x16xf32>
      %cst_25 = arith.constant dense<0.000000e+00> : vector<8x16xf32>
      %46 = tpu.matmul %44, %45, %cst_25 {dimension_numbers = #tpu.dot_dimension_numbers<[1], [0], [0], [1], [0, 0, 1, 1], [], []>} : vector<8x64xf32>, vector<64x16xf32>, vector<8x16xf32> -> vector<8x16xf32>
      %47 = vector.extract_strided_slice %16 {offsets = [0, 0], sizes = [1, 16], strides = [1, 1]} : vector<3x16xf32> to vector<1x16xf32>
      %48 = vector.broadcast %47 : vector<1x16xf32> to vector<8x16xf32>
      %49 = arith.addf %46, %48 : vector<8x16xf32>
      %50 = vector.extract_strided_slice %16 {offsets = [1, 0], sizes = [1, 16], strides = [1, 1]} : vector<3x16xf32> to vector<1x16xf32>
      %51 = vector.extract_strided_slice %16 {offsets = [2, 0], sizes = [1, 16], strides = [1, 1]} : vector<3x16xf32> to vector<1x16xf32>
      %cst_26 = arith.constant dense<0.000000e+00> : vector<16xf32>
      %52 = vector.multi_reduction <add>, %49, %cst_26 [0] : vector<8x16xf32> to vector<16xf32>
      %53 = vector.shape_cast %52 : vector<16xf32> to vector<1x16xf32>
      %cst_27 = arith.constant 8.000000e+00 : f32
      %54 = vector.broadcast %cst_27 : f32 to vector<1x16xf32>
      %55 = arith.divf %53, %54 : vector<1x16xf32>
      %56 = vector.broadcast %55 : vector<1x16xf32> to vector<8x16xf32>
      %57 = arith.subf %49, %56 : vector<8x16xf32>
      %58 = arith.mulf %57, %57 : vector<8x16xf32>
      %cst_28 = arith.constant dense<0.000000e+00> : vector<16xf32>
      %59 = vector.multi_reduction <add>, %58, %cst_28 [0] : vector<8x16xf32> to vector<16xf32>
      %60 = vector.shape_cast %59 : vector<16xf32> to vector<1x16xf32>
      %cst_29 = arith.constant 8.000000e+00 : f32
      %61 = vector.broadcast %cst_29 : f32 to vector<1x16xf32>
      %62 = arith.divf %60, %61 : vector<1x16xf32>
      %cst_30 = arith.constant 9.99999974E-6 : f32
      %63 = vector.broadcast %cst_30 : f32 to vector<1x16xf32>
      %64 = arith.addf %62, %63 : vector<1x16xf32>
      %65 = math.rsqrt %64 : vector<1x16xf32>
      %66 = vector.broadcast %65 : vector<1x16xf32> to vector<8x16xf32>
      %67 = arith.mulf %57, %66 : vector<8x16xf32>
      %68 = vector.broadcast %50 : vector<1x16xf32> to vector<8x16xf32>
      %69 = arith.mulf %67, %68 : vector<8x16xf32>
      %70 = vector.broadcast %51 : vector<1x16xf32> to vector<8x16xf32>
      %71 = arith.addf %69, %70 : vector<8x16xf32>
      %72 = vector.extract_strided_slice %71 {offsets = [0, 0], sizes = [8, 8], strides = [1, 1]} : vector<8x16xf32> to vector<8x8xf32>
      %73 = vector.extract_strided_slice %71 {offsets = [0, 8], sizes = [8, 8], strides = [1, 1]} : vector<8x16xf32> to vector<8x8xf32>
      %cst_31 = arith.constant 5.000000e-01 : f32
      %74 = vector.broadcast %cst_31 : f32 to vector<8x8xf32>
      %75 = arith.mulf %74, %73 : vector<8x8xf32>
      %76 = math.exp %75 : vector<8x8xf32>
      %c0_32 = arith.constant 0 : index
      %c0_33 = arith.constant 0 : index
      %77 = vector.load %arg8[%c0_32, %c0_33] : memref<8x8xf32, #tpu.memory_space<vmem>>, vector<8x8xf32>
      %78 = arith.mulf %77, %76 : vector<8x8xf32>
      %79 = arith.addf %78, %72 : vector<8x8xf32>
      %c0_34 = arith.constant 0 : index
      %c0_35 = arith.constant 0 : index
      %80 = vector.load %arg5[%c0_34, %c0_35] : memref<8x64xf32, #tpu.memory_space<vmem>>, vector<8x64xf32>
      %cst_36 = arith.constant dense<0.000000e+00> : vector<8x64xf32>
      %81 = tpu.matmul %79, %80, %cst_36 {dimension_numbers = #tpu.dot_dimension_numbers<[1], [0], [0], [1], [0, 0, 1, 1], [], []>} : vector<8x8xf32>, vector<8x64xf32>, vector<8x64xf32> -> vector<8x64xf32>
      %82 = vector.extract_strided_slice %15 {offsets = [3, 0], sizes = [1, 64], strides = [1, 1]} : vector<6x64xf32> to vector<1x64xf32>
      %83 = vector.broadcast %82 : vector<1x64xf32> to vector<8x64xf32>
      %84 = arith.addf %81, %83 : vector<8x64xf32>
      %85 = vector.extract_strided_slice %15 {offsets = [4, 0], sizes = [1, 64], strides = [1, 1]} : vector<6x64xf32> to vector<1x64xf32>
      %86 = vector.extract_strided_slice %15 {offsets = [5, 0], sizes = [1, 64], strides = [1, 1]} : vector<6x64xf32> to vector<1x64xf32>
      %cst_37 = arith.constant dense<0.000000e+00> : vector<64xf32>
      %87 = vector.multi_reduction <add>, %84, %cst_37 [0] : vector<8x64xf32> to vector<64xf32>
      %88 = vector.shape_cast %87 : vector<64xf32> to vector<1x64xf32>
      %cst_38 = arith.constant 8.000000e+00 : f32
      %89 = vector.broadcast %cst_38 : f32 to vector<1x64xf32>
      %90 = arith.divf %88, %89 : vector<1x64xf32>
      %91 = vector.broadcast %90 : vector<1x64xf32> to vector<8x64xf32>
      %92 = arith.subf %84, %91 : vector<8x64xf32>
      %93 = arith.mulf %92, %92 : vector<8x64xf32>
      %cst_39 = arith.constant dense<0.000000e+00> : vector<64xf32>
      %94 = vector.multi_reduction <add>, %93, %cst_39 [0] : vector<8x64xf32> to vector<64xf32>
      %95 = vector.shape_cast %94 : vector<64xf32> to vector<1x64xf32>
      %cst_40 = arith.constant 8.000000e+00 : f32
      %96 = vector.broadcast %cst_40 : f32 to vector<1x64xf32>
      %97 = arith.divf %95, %96 : vector<1x64xf32>
      %cst_41 = arith.constant 9.99999974E-6 : f32
      %98 = vector.broadcast %cst_41 : f32 to vector<1x64xf32>
      %99 = arith.addf %97, %98 : vector<1x64xf32>
      %100 = math.rsqrt %99 : vector<1x64xf32>
      %101 = vector.broadcast %100 : vector<1x64xf32> to vector<8x64xf32>
      %102 = arith.mulf %92, %101 : vector<8x64xf32>
      %103 = vector.broadcast %85 : vector<1x64xf32> to vector<8x64xf32>
      %104 = arith.mulf %102, %103 : vector<8x64xf32>
      %105 = vector.broadcast %86 : vector<1x64xf32> to vector<8x64xf32>
      %106 = arith.addf %104, %105 : vector<8x64xf32>
      %cst_42 = arith.constant 0.000000e+00 : f32
      %107 = vector.broadcast %cst_42 : f32 to vector<8x64xf32>
      %108 = arith.maximumf %106, %107 : vector<8x64xf32>
      %c0_43 = arith.constant 0 : index
      %c0_44 = arith.constant 0 : index
      %109 = vector.load %arg9[%c0_43, %c0_44] : memref<8x8xf32, #tpu.memory_space<vmem>>, vector<8x8xf32>
      tpu.vector_store %arg9[%c0_43, %c0_44], %72 {strides = array<i32>} : memref<8x8xf32, #tpu.memory_space<vmem>>, vector<8x8xf32>,
      %c0_45 = arith.constant 0 : index
      %c0_46 = arith.constant 0 : index
      %110 = vector.load %arg10[%c0_45, %c0_46] : memref<8x8xf32, #tpu.memory_space<vmem>>, vector<8x8xf32>
      tpu.vector_store %arg10[%c0_45, %c0_46], %73 {strides = array<i32>} : memref<8x8xf32, #tpu.memory_space<vmem>>, vector<8x8xf32>,
      %c0_47 = arith.constant 0 : index
      %c0_48 = arith.constant 0 : index
      %111 = vector.load %arg11[%c0_47, %c0_48] : memref<8x8xf32, #tpu.memory_space<vmem>>, vector<8x8xf32>
      tpu.vector_store %arg11[%c0_47, %c0_48], %79 {strides = array<i32>} : memref<8x8xf32, #tpu.memory_space<vmem>>, vector<8x8xf32>,
      %c0_49 = arith.constant 0 : index
      %c0_50 = arith.constant 0 : index
      %112 = vector.load %arg12[%c0_49, %c0_50] : memref<8x64xf32, #tpu.memory_space<vmem>>, vector<8x64xf32>
      tpu.vector_store %arg12[%c0_49, %c0_50], %108 {strides = array<i32>} : memref<8x64xf32, #tpu.memory_space<vmem>>, vector<8x64xf32>,
    } else {
    }
    return
  }
  func.func @transform_0(%arg0: i32) -> (i32, i32) {
    %c0_i32 = arith.constant 0 : i32
    %c0_i32_0 = arith.constant 0 : i32
    return %c0_i32, %arg0 : i32, i32
  }
  func.func @transform_1(%arg0: i32) -> (i32, i32) {
    %c0_i32 = arith.constant 0 : i32
    %c0_i32_0 = arith.constant 0 : i32
    return %arg0, %c0_i32 : i32, i32
  }
  func.func @transform_2(%arg0: i32) -> (i32, i32) {
    %c0_i32 = arith.constant 0 : i32
    %c0_i32_0 = arith.constant 0 : i32
    return %arg0, %c0_i32 : i32, i32
  }
  func.func @transform_3(%arg0: i32) -> (i32, i32) {
    %c0_i32 = arith.constant 0 : i32
    %c0_i32_0 = arith.constant 0 : i32
    %c0_i32_1 = arith.constant 0 : i32
    return %c0_i32, %c0_i32_0 : i32, i32
  }
  func.func @transform_4(%arg0: i32) -> (i32, i32) {
    %c0_i32 = arith.constant 0 : i32
    %c0_i32_0 = arith.constant 0 : i32
    %c0_i32_1 = arith.constant 0 : i32
    return %c0_i32, %c0_i32_0 : i32, i32
  }
  func.func @transform_5(%arg0: i32) -> (i32, i32) {
    %c0_i32 = arith.constant 0 : i32
    %c0_i32_0 = arith.constant 0 : i32
    %c0_i32_1 = arith.constant 0 : i32
    return %c0_i32, %c0_i32_0 : i32, i32
  }
  func.func @transform_6(%arg0: i32) -> (i32, i32) {
    %c0_i32 = arith.constant 0 : i32
    %c0_i32_0 = arith.constant 0 : i32
    %c0_i32_1 = arith.constant 0 : i32
    return %c0_i32, %c0_i32_0 : i32, i32
  }
  func.func @transform_7(%arg0: i32) -> (i32, i32) {
    %c0_i32 = arith.constant 0 : i32
    %c0_i32_0 = arith.constant 0 : i32
    %c0_i32_1 = arith.constant 0 : i32
    return %c0_i32, %c0_i32_0 : i32, i32
  }
  func.func @transform_8(%arg0: i32) -> (i32, i32) {
    %c0_i32 = arith.constant 0 : i32
    %c0_i32_0 = arith.constant 0 : i32
    %c0_i32_1 = arith.constant 0 : i32
    return %c0_i32, %c0_i32_0 : i32, i32
  }
  func.func @transform_9(%arg0: i32) -> (i32, i32) {
    %c0_i32 = arith.constant 0 : i32
    %c0_i32_0 = arith.constant 0 : i32
    %c0_i32_1 = arith.constant 0 : i32
    return %c0_i32, %c0_i32_0 : i32, i32
  }
  func.func @transform_10(%arg0: i32) -> (i32, i32) {
    %c0_i32 = arith.constant 0 : i32
    %c0_i32_0 = arith.constant 0 : i32
    %c0_i32_1 = arith.constant 0 : i32
    return %c0_i32, %c0_i32_0 : i32, i32
  }
  func.func @transform_11(%arg0: i32) -> (i32, i32) {
    %c0_i32 = arith.constant 0 : i32
    %c0_i32_0 = arith.constant 0 : i32
    %c0_i32_1 = arith.constant 0 : i32
    return %c0_i32, %c0_i32_0 : i32, i32
  }
}

</mosaic_0001>

<bundles_post_ra>
// kernel: tpu_custom_call.1
= control target key start
LH: loop header
LB: loop body
LE: loop exit
PB: predicated region body
PF: predicated region fallthrough
CT: control target
= control target key end

     0   :  { %17 = vsyncpa [#allocation4], 0  ;;  %s1269_s0 = inlined_call_operand.vmem [shape: f32[8,256], index: 0, kind: input, shape index: {}]   ;;  %s1270_s1 = inlined_call_operand.vmem [shape: f32[256,64], index: 1, kind: input, shape index: {}]   ;;  %s1271_s2 = inlined_call_operand.vmem [shape: s8[256,64], index: 2, kind: input, shape index: {}]   ;;  %s1272_s3 = inlined_call_operand.vmem [shape: f32[64,16], index: 3, kind: input, shape index: {}]   ;;  %s1273_s4 = inlined_call_operand.vmem [shape: f32[8,64], index: 4, kind: input, shape index: {}]   ;;  %s1274_s5 = inlined_call_operand.vmem [shape: f32[6,64], index: 5, kind: input, shape index: {}]   ;;  %s1275_s6 = inlined_call_operand.vmem [shape: f32[3,16], index: 6, kind: input, shape index: {}]   ;;  %s1276_s7 = inlined_call_operand.vmem [shape: f32[8,8], index: 7, kind: input, shape index: {}]   ;;  %s1277_s8 = inlined_call_operand.hbm [shape: f32[8,8], index: 8, kind: output, shape index: {0}]   ;;  %s1278_s9 = inlined_call_operand.hbm [shape: f32[8,8], index: 9, kind: output, shape index: {1}]   ;;  %s1279_s10 = inlined_call_operand.hbm [shape: f32[8,8], index: 10, kind: output, shape index: {2}]   ;;  %s1280_s11 = inlined_call_operand.hbm [shape: f32[8,64], index: 11, kind: output, shape index: {3}]  }
   0x1   :  { %18 = vsyncpa [#allocation6], 0 }
   0x2   :  { %19 = vsyncpa [#allocation9], 0  ;;  %s1118_s17 = smov 0  }
   0x3 LB: > { %s1124_s18 = sadd.s32 4294967295, %s1049_s17   ;;  %p850_p0 = scmp.ge.s32.totalorder %s1049_s17, 1  ;;  %s1049_s17 = sphi %s1118_s17, %s25_s17  }
   0x4   : > { %p348_p1 = scmp.lt.s32.totalorder %s1049_s17, 3 }
   0x6   : > { %p349_p2 = pnand %p850_p0, %p348_p1 }
   0x7   : > { %p392_p3 = scmp.lt.s32.totalorder (!%p349_p2), %s1124_s18, 1  ;;  %s852_s19 = sshll.u32 (!%p349_p2), %s1124_s18, 4 }
   0x8   : > { %352 = sbr.rel (%p349_p2) target bundleno = 788 (0x314), region = 52  ;;  %p397_p4 = scmp.lt.s32.totalorder (!%p349_p2), %s852_s19, 31 }
   0x9   : > { %s854_s20 = sshll.u32 (!%p349_p2), %s1124_s18, 2  ;;  %p856_p6 = scmp.ne.s32.totalorder (!%p349_p2), %s1124_s18, 0 }
   0xa   : > { %p403_p5 = scmp.lt.s32.totalorder (!%p349_p2), %s854_s20, 7 }
   0xd   : > { %s393_s21 = scalar_select %p392_p3, %s1124_s18, 1 }
   0xe   : > { %s1282_s19 = smov (!%p397_p4, %s852_s19), 31  ;;  %s1284_s20 = smov (!%p403_p5, %s854_s20), 7 }
   0xf   : > { %s851_s22 = sshll.u32 %s393_s21, 3  ;;  %s853_s26 = sshll.u32 %s1282_s19, 3 }
  0x10   : > { %s1135_s25 = scalar_lea.vmem %s1269_s0, %s851_s22  ;;  %s1140_s29 = scalar_lea.vmem %s1270_s1, %s853_s26 }
  0x11   : > { %s855_s30 = sshll.u32 %s1284_s20, 3  ;;  %411 = sbr.rel (%p856_p6) target bundleno = 24 (0x18), region = 56 }
  0x12   : > { %s1145_s14 = scalar_lea.vmem %s1271_s2, %s855_s30 }
  0x16   : > { %vm412_vm0 = vcmask 523264   ;;  %v1051_v0 = vmov 0.0  }
  0x17   : > { %413 = vst.msk [vmem:[#allocation2] sm:$0xff] %vm412_vm0, %v1051_v0 }
  0x18 PF: > { %v433_v1 = vld [vmem:[%s1145_s14 + $0x18] sm:$0xff]  ;;  %v428_v7 = vld [vmem:[%s1140_s29 + $0x70] sm:$0xff]  ;;  %v427_v12 = vld [vmem:[%s1140_s29 + $0x68] sm:$0xff]  ;;  %vm505_vm1 = vcmask 523264   ;;  %p857_p7 = scmp.ne.s32.totalorder %s1124_s18, 1 }
  0x19   : > { %v449_v2 = vunpack.c.3.s8 %v433_v1  ;;  %v448_v3 = vunpack.c.2.s8 %v433_v1  ;;  %v447_v4 = vunpack.c.1.s8 %v433_v1  ;;  %v446_v5 = vunpack.c.0.s8 %v433_v1  ;;  %v429_v6 = vld [vmem:[%s1140_s29 + $0x78] sm:$0xff]  ;;  %v432_v8 = vld [vmem:[%s1145_s14 + $0x10] sm:$0xff]  ;;  %v426_v18 = vld [vmem:[%s1140_s29 + $0x60] sm:$0xff]  ;;  %s1053_s20 = smov (!%p857_p7), 120  }
  0x1a   : > { %v445_v13 = vunpack.c.3.s8 %v432_v8  ;;  %v444_v17 = vunpack.c.2.s8 %v432_v8  ;;  %v443_v21 = vunpack.c.1.s8 %v432_v8  ;;  %v425_v22 = vld [vmem:[%s1140_s29 + $0x58] sm:$0xff]  ;;  %v431_v23 = vld [vmem:[%s1145_s14 + $0x8] sm:$0xff]  ;;  %v442_v26 = vunpack.c.0.s8 %v432_v8  ;;  %v424_v27 = vld [vmem:[%s1140_s29 + $0x50] sm:$0xff] }
  0x1b   : > { %v465_v9 = vcvt.s32.f32 %v449_v2  ;;  %v464_v10 = vcvt.s32.f32 %v448_v3  ;;  %v463_v11 = vcvt.s32.f32 %v447_v4  ;;  %v462_v16 = vcvt.s32.f32 %v446_v5  ;;  %v423_v31 = vld [vmem:[%s1140_s29 + $0x48] sm:$0xff]  ;;  %v422_v35 = vld [vmem:[%s1140_s29 + $0x40] sm:$0xff]  ;;  %v421_v39 = vld [vmem:[%s1140_s29 + $0x38] sm:$0xff] }
  0x1c   : > { %v461_v20 = vcvt.s32.f32 %v445_v13  ;;  %v460_v25 = vcvt.s32.f32 %v444_v17  ;;  %v459_v29 = vcvt.s32.f32 %v443_v21  ;;  %v441_v30 = vunpack.c.3.s8 %v431_v23  ;;  %v430_v40 = vld [vmem:[%s1145_s14] sm:$0xff]  ;;  %v420_v44 = vld [vmem:[%s1140_s29 + $0x30] sm:$0xff]  ;;  %v419_v48 = vld [vmem:[%s1140_s29 + $0x28] sm:$0xff] }
  0x1d   : > { %v481_v14 = vmul.f32 %v465_v9, %v429_v6  ;;  %v480_v15 = vmul.f32 %v464_v10, %v428_v7  ;;  %v479_v19 = vmul.f32 %v463_v11, %v427_v12  ;;  %v478_v24 = vmul.f32 %v462_v16, %v426_v18  ;;  %v418_v52 = vld [vmem:[%s1140_s29 + $0x20] sm:$0xff]  ;;  %v417_v56 = vld [vmem:[%s1140_s29 + $0x18] sm:$0xff]  ;;  %v416_v60 = vld [vmem:[%s1140_s29 + $0x10] sm:$0xff] }
  0x1e   : > { %v477_v28 = vmul.f32 %v461_v20, %v425_v22  ;;  %v476_v32 = vmul.f32 %v460_v25, %v424_v27  ;;  %v458_v33 = vcvt.s32.f32 %v442_v26  ;;  %v440_v34 = vunpack.c.2.s8 %v431_v23  ;;  %v415_v63 = vld [vmem:[%s1140_s29 + $0x8] sm:$0xff]  ;;  %v414_v2 = vld [vmem:[%s1140_s29] sm:$0xff] }
  0x1f   : > { %484 = vmatpush.msra.mxu0 %v481_v14  ;;  %v475_v36 = vmul.f32 %v459_v29, %v423_v31  ;;  %v457_v37 = vcvt.s32.f32 %v441_v30  ;;  %v439_v38 = vunpack.c.1.s8 %v431_v23  ;;  %v438_v43 = vunpack.c.0.s8 %v431_v23  ;;  %v483_v5 = vld [vmem:[%s1135_s25] sm:$0xff] }
  0x20   : > { %v474_v41 = vmul.f32 %v458_v33, %v422_v35  ;;  %v456_v42 = vcvt.s32.f32 %v440_v34  ;;  %v437_v47 = vunpack.c.3.s8 %v430_v40  ;;  %v436_v51 = vunpack.c.2.s8 %v430_v40  ;;  %v482_v6 = vld [vmem:[#allocation2] sm:$0xff] }
  0x21   : > { %485 = vmatpush.msra.mxu0 %v480_v15  ;;  %v473_v45 = vmul.f32 %v457_v37, %v421_v39  ;;  %v455_v46 = vcvt.s32.f32 %v439_v38  ;;  %v454_v50 = vcvt.s32.f32 %v438_v43  ;;  %v435_v55 = vunpack.c.1.s8 %v430_v40 }
  0x22   : > { %v472_v49 = vmul.f32 %v456_v42, %v420_v44  ;;  %v453_v54 = vcvt.s32.f32 %v437_v47  ;;  %v452_v58 = vcvt.s32.f32 %v436_v51  ;;  %v434_v59 = vunpack.c.0.s8 %v430_v40 }
  0x23   : > { %486 = vmatpush.msra.mxu0 %v479_v19  ;;  %v471_v53 = vmul.f32 %v455_v46, %v419_v48  ;;  %v470_v57 = vmul.f32 %v454_v50, %v418_v52  ;;  %v451_v62 = vcvt.s32.f32 %v435_v55 }
  0x24   : > { %v469_v61 = vmul.f32 %v453_v54, %v417_v56  ;;  %v468_v0 = vmul.f32 %v452_v58, %v416_v60  ;;  %v450_v1 = vcvt.s32.f32 %v434_v59 }
  0x25   : > { %487 = vmatpush.msra.mxu0 %v478_v24  ;;  %v467_v3 = vmul.f32 %v451_v62, %v415_v63 }
  0x26   : > { %v466_v4 = vmul.f32 %v450_v1, %v414_v2 }
  0x27   : > { %488 = vmatpush.msra.mxu0 %v477_v28 }
  0x29   : > { %489 = vmatpush.msra.mxu0 %v476_v32 }
  0x2b   : > { %490 = vmatpush.msra.mxu0 %v475_v36 }
  0x2d   : > { %491 = vmatpush.msra.mxu0 %v474_v41 }
  0x2f   : > { %492 = vmatpush.msra.mxu0 %v473_v45 }
  0x31   : > { %493 = vmatpush.msra.mxu0 %v472_v49 }
  0x33   : > { %494 = vmatpush.msra.mxu0 %v471_v53 }
  0x35   : > { %495 = vmatpush.msra.mxu0 %v470_v57 }
  0x37   : > { %496 = vmatpush.msra.mxu0 %v469_v61 }
  0x39   : > { %497 = vmatpush.msra.mxu0 %v468_v0 }
  0x3b   : > { %498 = vmatpush.msra.mxu0 %v467_v3 }
  0x3d   : > { %499 = vmatpush.msra.mxu0 %v466_v4 }
  0x3e   : > { %500 = vmatmul.f32.vlgmr.msra.gmra.mxu0 %v483_v5 }
  0xba   : > { %510 = sbr.rel (%p857_p7) target bundleno = 771 (0x303), region = 60 }
  0xbb   : > { %v501_v7 = vpop.f32.mrf.mxu0 }
  0xbc   : > { %v504_v8 = vadd.f32 %v501_v7, %v482_v6 }
  0xbe   : > { %506 = vst.msk [vmem:[#allocation2] sm:$0xff] %vm505_vm1, %v504_v8 }
  0xbf   : > { %v565_v9 = vld [vmem:[%s1272_s3 + $0x38] sm:$0xff]  ;;  %v564_v10 = vld [vmem:[%s1272_s3 + $0x30] sm:$0xff]  ;;  %v1052_v11 = vmov 8.0   ;;  %v563_v12 = vld [vmem:[%s1272_s3 + $0x28] sm:$0xff]  ;;  %vm590_vm6 = vcmask 130048   ;;  %vm637_vm10 = vcmask 64512  }
  0xc0   : > { %578 = vmatpush.msra.mxu0 %v565_v9  ;;  %909 = vrcp.f32 %v1052_v11  ;;  %v1183_v13 = vld [vmem:[%s1274_s5] sm:$0x3f]  ;;  %v561_v18 = vld [vmem:[%s1272_s3 + $0x18] sm:$0xff]  ;;  %v560_v21 = vld [vmem:[%s1272_s3 + $0x10] sm:$0xff] }
  0xc1   : > { %v514_v15 = vperm.slane %v1183_v13, 0  ;;  %v562_v16 = vld [vmem:[%s1272_s3 + $0x20] sm:$0xff]  ;;  %v559_v24 = vld [vmem:[%s1272_s3 + $0x8] sm:$0xff]  ;;  %v553_v53 = vperm.slane %v1183_v13, 1  ;;  %v555_v56 = vperm.slane %v1183_v13, 2 }
  0xc2   : > { %579 = vmatpush.msra.mxu0 %v564_v10  ;;  %v558_v27 = vld [vmem:[%s1272_s3] sm:$0xff] }
  0xc3   : > { %v512_v60 = vld [vmem:[%s1275_s6] sm:$0x7] }
  0xc4   : > { %580 = vmatpush.msra.mxu0 %v563_v12  ;;  %v566_v61 = vperm.slane %v512_v60, 0 }
  0xc5   : > { %v513_v14 = vld [vmem:[#allocation2] sm:$0xff] }
  0xc6   : > { %v515_v17 = vadd.f32 %v514_v15, %v513_v14  ;;  %v910_v19 = vpop.eup %909  ;;  %581 = vmatpush.msra.mxu0 %v562_v16 }
  0xc7   : > { %v524_v23 = vmul.f32 8.0, %v910_v19  ;;  %vm528_vm2 = vweird.f32 %v910_v19 }
  0xc8   : > { %v516_v20 = vsel %vm505_vm1, %v515_v17, 0.0  ;;  %582 = vmatpush.msra.mxu0 %v561_v18 }
  0xc9   : > { %v517_v22 = vrot.slane %v516_v20, 4  ;;  %v525_v26 = vsub.f32 1.0, %v524_v23 }
  0xca   : > { %583 = vmatpush.msra.mxu0 %v560_v21 }
  0xcb   : > { %v518_v25 = vadd.f32 %v517_v22, %v516_v20  ;;  %v526_v29 = vmul.f32 %v910_v19, %v525_v26  ;;  %v621_v26 = vperm.slane %v512_v60, 1 }
  0xcc   : > { %584 = vmatpush.msra.mxu0 %v559_v24 }
  0xcd   : > { %v519_v28 = vrot.slane %v518_v25, 2  ;;  %v527_v31 = vadd.f32 %v910_v19, %v526_v29  ;;  %v623_v29 = vperm.slane %v512_v60, 2 }
  0xce   : > { %585 = vmatpush.msra.mxu0 %v558_v27 }
  0xcf   : > { %v520_v30 = vadd.f32 %v519_v28, %v518_v25  ;;  %v1202_v33 = vsel %vm528_vm2, %v910_v19, %v527_v31 }
  0xd1   : > { %v521_v32 = vrot.slane %v520_v30, 1 }
  0xd3   : > { %v522_v34 = vadd.f32 %v521_v32, %v520_v30 }
  0xd5   : > { %v530_v35 = vmul.f32 %v1202_v33, %v522_v34 }
  0xd7   : > { %v531_v36 = vsub.f32 %v515_v17, %v530_v35 }
  0xd9   : > { %v532_v37 = vmul.f32 %v531_v36, %v531_v36 }
  0xdb   : > { %v533_v38 = vsel %vm505_vm1, %v532_v37, 0.0  ;;  %v628_v37 = vld [vmem:[%s1276_s7] sm:$0xff] }
  0xdc   : > { %v534_v39 = vrot.slane %v533_v38, 4 }
  0xde   : > { %v535_v40 = vadd.f32 %v534_v39, %v533_v38 }
  0xe0   : > { %v536_v41 = vrot.slane %v535_v40, 2 }
  0xe2   : > { %v537_v42 = vadd.f32 %v536_v41, %v535_v40 }
  0xe4   : > { %v538_v43 = vrot.slane %v537_v42, 1 }
  0xe6   : > { %v539_v44 = vadd.f32 %v538_v43, %v537_v42  ;;  %v636_v42 = vperm.slane %v1183_v13, 3 }
  0xe8   : > { %v540_v45 = vmul.f32 %v539_v44, %v1202_v33 }
  0xea   : > { %v541_v46 = vadd.f32 1e-05, %v540_v45 }
  0xec   : > { %911 = vrsqrt.f32 %v541_v46  ;;  %vm548_vm3 = vweird.f32 %v541_v46 }
  0xf2   : > { %v912_v47 = vpop.eup %911 }
  0xf3   : > { %v543_v48 = vmul.f32 %v912_v47, %v541_v46  ;;  %vm549_vm4 = vweird.f32 %v912_v47 }
  0xf4   : > { %vm550_vm5 = vmor %vm548_vm3, %vm549_vm4 }
  0xf5   : > { %v544_v49 = vmul.f32 %v912_v47, %v543_v48 }
  0xf7   : > { %v545_v50 = vmul.f32 0.5, %v544_v49 }
  0xf9   : > { %v546_v51 = vsub.f32 1.5, %v545_v50 }
  0xfb   : > { %v547_v52 = vmul.f32 %v912_v47, %v546_v51 }
  0xfd   : > { %v551_v54 = vsel %vm550_vm5, %v912_v47, %v547_v52 }
  0xfe   : > { %v552_v55 = vmul.f32 %v551_v54, %v531_v36  ;;  %v635_v36 = vld [vmem:[%s1273_s4] sm:$0xff] }
  0xff   : > { %656 = vmatpush.msra.mxu1 %v635_v36 }
 0x100   : > { %v554_v57 = vmul.f32 %v553_v53, %v552_v55 }
 0x102   : > { %v556_v58 = vadd.f32 %v555_v56, %v554_v57 }
 0x104   : > { %v557_v59 = vmax.f32 %v556_v58, 0.0 }
 0x106   : > { %858 = vmatmul.msk.f32.vlgmr.msra.gmra.mxu0 %vm505_vm1, %v557_v59 }
 0x183   : > { %v587_v62 = vpop.f32.mrf.mxu0 }
 0x184   : > { %v588_v63 = vadd.f32 %v587_v62, %v566_v61 }
 0x186   : > { %v591_v0 = vsel %vm590_vm6, %v588_v63, 0.0 }
 0x187   : > { %v592_v1 = vrot.slane %v591_v0, 4 }
 0x189   : > { %v593_v2 = vadd.f32 %v592_v1, %v591_v0 }
 0x18b   : > { %v594_v3 = vrot.slane %v593_v2, 2 }
 0x18d   : > { %v595_v4 = vadd.f32 %v594_v3, %v593_v2 }
 0x18f   : > { %v596_v5 = vrot.slane %v595_v4, 1 }
 0x191   : > { %v597_v6 = vadd.f32 %v596_v5, %v595_v4 }
 0x193   : > { %v598_v7 = vmul.f32 %v597_v6, %v1202_v33  ;;  %v691_v6 = vperm.slane %v1183_v13, 4 }
 0x195   : > { %v599_v8 = vsub.f32 %v588_v63, %v598_v7 }
 0x197   : > { %v600_v9 = vmul.f32 %v599_v8, %v599_v8 }
 0x199   : > { %v601_v10 = vsel %vm590_vm6, %v600_v9, 0.0  ;;  %v693_v9 = vperm.slane %v1183_v13, 5 }
 0x19a   : > { %v602_v11 = vrot.slane %v601_v10, 4 }
 0x19c   : > { %v603_v12 = vadd.f32 %v602_v11, %v601_v10 }
 0x19e   : > { %v604_v14 = vrot.slane %v603_v12, 2 }
 0x1a0   : > { %v605_v15 = vadd.f32 %v604_v14, %v603_v12 }
 0x1a2   : > { %v606_v16 = vrot.slane %v605_v15, 1 }
 0x1a4   : > { %v607_v17 = vadd.f32 %v606_v16, %v605_v15 }
 0x1a6   : > { %v608_v18 = vmul.f32 %v607_v17, %v1202_v33 }
 0x1a8   : > { %v609_v19 = vadd.f32 1e-05, %v608_v18 }
 0x1aa   : > { %913 = vrsqrt.f32 %v609_v19  ;;  %vm616_vm8 = vweird.f32 %v609_v19 }
 0x1b0   : > { %v914_v20 = vpop.eup %913 }
 0x1b1   : > { %v611_v21 = vmul.f32 %v914_v20, %v609_v19  ;;  %vm617_vm7 = vweird.f32 %v914_v20 }
 0x1b2   : > { %vm618_vm9 = vmor %vm616_vm8, %vm617_vm7 }
 0x1b3   : > { %v612_v22 = vmul.f32 %v914_v20, %v611_v21 }
 0x1b5   : > { %v613_v23 = vmul.f32 0.5, %v612_v22 }
 0x1b7   : > { %v614_v24 = vsub.f32 1.5, %v613_v23 }
 0x1b9   : > { %v615_v25 = vmul.f32 %v914_v20, %v614_v24 }
 0x1bb   : > { %v619_v27 = vsel %vm618_vm9, %v914_v20, %v615_v25 }
 0x1bc   : > { %v620_v28 = vmul.f32 %v619_v27, %v599_v8 }
 0x1be   : > { %v622_v30 = vmul.f32 %v621_v26, %v620_v28 }
 0x1c0   : > { %v624_v31 = vadd.f32 %v623_v29, %v622_v30 }
 0x1c2   : > { %v625_v32 = vmul.f32 0.5, %v624_v31  ;;  %696 = vst.msk [vmem:[#allocation3] sm:$0xff] %vm637_vm10, %v624_v31 }
 0x1c4   : > { %v626_v34 = vmul.f32 1.442695, %v625_v32 }
 0x1c6   : > { %915 = vpow2.f32 %v626_v34 }
 0x1cc   : > { %v916_v35 = vpop.eup %915 }
 0x1cd   : > { %630 = vrot.lane.b32.xlu0 %v916_v35, %s1053_s20 }
 0x1d5   : > { %698 = vrot.lane.b32.xlu0 %v624_v31, %s1053_s20 }
 0x23f   : > { %v631_v38 = vpop.permute.xlu0 %630 }
 0x240   : > { %v633_v39 = vmul.f32 %v631_v38, %v628_v37 }
 0x242   : > { %v634_v40 = vadd.f32 %v633_v39, %v624_v31 }
 0x244   : > { %859 = vmatmul.msk.f32.vlgmr.msra.gmra.mxu1 %vm637_vm10, %v634_v40  ;;  %702 = vst.msk [vmem:[#allocation7] sm:$0xff] %vm637_vm10, %v634_v40 }
 0x247   : > { %v699_v41 = vpop.permute.xlu0 %698 }
 0x248   : > { %701 = vst.msk [vmem:[#allocation5] sm:$0xff] %vm637_vm10, %v699_v41 }
 0x2c1   : > { %v658_v43 = vpop.f32.mrf.mxu1 }
 0x2c2   : > { %v659_v44 = vadd.f32 %v658_v43, %v636_v42 }
 0x2c4   : > { %v661_v45 = vsel %vm505_vm1, %v659_v44, 0.0 }
 0x2c5   : > { %v662_v46 = vrot.slane %v661_v45, 4 }
 0x2c7   : > { %v663_v47 = vadd.f32 %v662_v46, %v661_v45 }
 0x2c9   : > { %v664_v48 = vrot.slane %v663_v47, 2 }
 0x2cb   : > { %v665_v49 = vadd.f32 %v664_v48, %v663_v47 }
 0x2cd   : > { %v666_v50 = vrot.slane %v665_v49, 1 }
 0x2cf   : > { %v667_v51 = vadd.f32 %v666_v50, %v665_v49 }
 0x2d1   : > { %v668_v52 = vmul.f32 %v667_v51, %v1202_v33 }
 0x2d3   : > { %v669_v53 = vsub.f32 %v659_v44, %v668_v52 }
 0x2d5   : > { %v670_v54 = vmul.f32 %v669_v53, %v669_v53 }
 0x2d7   : > { %v671_v55 = vsel %vm505_vm1, %v670_v54, 0.0 }
 0x2d8   : > { %v672_v56 = vrot.slane %v671_v55, 4 }
 0x2da   : > { %v673_v57 = vadd.f32 %v672_v56, %v671_v55 }
 0x2dc   : > { %v674_v58 = vrot.slane %v673_v57, 2 }
 0x2de   : > { %v675_v59 = vadd.f32 %v674_v58, %v673_v57 }
 0x2e0   : > { %v676_v60 = vrot.slane %v675_v59, 1 }
 0x2e2   : > { %v677_v61 = vadd.f32 %v676_v60, %v675_v59 }
 0x2e4   : > { %v678_v62 = vmul.f32 %v677_v61, %v1202_v33 }
 0x2e6   : > { %v679_v63 = vadd.f32 1e-05, %v678_v62 }
 0x2e8   : > { %917 = vrsqrt.f32 %v679_v63  ;;  %vm686_vm12 = vweird.f32 %v679_v63 }
 0x2ee   : > { %v918_v0 = vpop.eup %917 }
 0x2ef   : > { %v681_v1 = vmul.f32 %v918_v0, %v679_v63  ;;  %vm687_vm11 = vweird.f32 %v918_v0 }
 0x2f0   : > { %vm688_vm13 = vmor %vm686_vm12, %vm687_vm11 }
 0x2f1   : > { %v682_v2 = vmul.f32 %v918_v0, %v681_v1 }
 0x2f3   : > { %v683_v3 = vmul.f32 0.5, %v682_v2 }
 0x2f5   : > { %v684_v4 = vsub.f32 1.5, %v683_v3 }
 0x2f7   : > { %v685_v5 = vmul.f32 %v918_v0, %v684_v4 }
 0x2f9   : > { %v689_v7 = vsel %vm688_vm13, %v918_v0, %v685_v5 }
 0x2fa   : > { %v690_v8 = vmul.f32 %v689_v7, %v669_v53 }
 0x2fc   : > { %v692_v10 = vmul.f32 %v691_v6, %v690_v8 }
 0x2fe   : > { %v694_v11 = vadd.f32 %v693_v9, %v692_v10 }
 0x300   : > { %v695_v33 = vmax.f32 %v694_v11, 0.0 }
 0x302   : > { %703 = vst.msk [vmem:[#allocation8] sm:$0xff] %vm505_vm1, %v695_v33 }
 0x303 PF: > { %p886_p8 = scmp.eq.s32.totalorder %s1124_s18, 1  ;;  %s1054_s25 = smov [#allocation5]  }
 0x304   : > { %s722_s26 = sshll.u32 %s1054_s25, 4  ;;  %s724_s29 = sshll.u32 %s1278_s9, 4  ;;  %s723_s26 = int_to_ptr.vmem [resolvable:$true] %s722_s26  ;;  %s725_s29 = int_to_ptr.hbm [resolvable:$true] %s724_s29 }
 0x305   : > { %873 = dma.vmem_to_hbm [thread:$0]  (%p886_p8), %s723_s26, 128, %s725_s29, [#allocation6]  }
 0x306   : > { %s712_s13 = sshll.u32 %s1277_s8, 4  ;;  %s1055_s14 = smov [#allocation3]   ;;  %s713_s13 = int_to_ptr.hbm [resolvable:$true] %s712_s13 }
 0x307   : > { %s710_s15 = sshll.u32 %s1055_s14, 4  ;;  %s1056_s16 = smov [#allocation7]   ;;  %s711_s15 = int_to_ptr.vmem [resolvable:$true] %s710_s15 }
 0x308   : > { %871 = dma.vmem_to_hbm [thread:$0]  (%p886_p8), %s711_s15, 128, %s713_s13, [#allocation4]  }
 0x309   : > { %s734_s19 = sshll.u32 %s1056_s16, 4  ;;  %s736_s22 = sshll.u32 %s1279_s10, 4  ;;  %s735_s19 = int_to_ptr.vmem [resolvable:$true] %s734_s19  ;;  %s737_s22 = int_to_ptr.hbm [resolvable:$true] %s736_s22 }
 0x30a   : > { %875 = dma.vmem_to_hbm [thread:$0]  (%p886_p8), %s735_s19, 128, %s737_s22, [#allocation6]  }
 0x30b   : > { %s748_s25 = sshll.u32 %s1280_s11, 4  ;;  %s1057_s26 = smov [#allocation8]   ;;  %s749_s25 = int_to_ptr.hbm [resolvable:$true] %s748_s25 }
 0x30c   : > { %s746_s27 = sshll.u32 %s1057_s26, 4  ;;  %s747_s27 = int_to_ptr.vmem [resolvable:$true] %s746_s27 }
 0x30d   : > { %877 = dma.vmem_to_hbm [thread:$0]  (%p886_p8), %s747_s27, 128, %s749_s25, [#allocation9]  }
 0x30e   : > { %1036 = dma.done.wait (%p886_p8), [#allocation4], 128  }
 0x30f   : > { %1038 = vsyncadd (%p886_p8), [#allocation4], 4294967168 }
 0x310   : > { %1040 = dma.done.wait (%p886_p8), [#allocation6], 256  }
 0x311   : > { %1042 = vsyncadd (%p886_p8), [#allocation6], 4294967040 }
 0x312   : > { %1044 = dma.done.wait (%p886_p8), [#allocation9], 128  }
 0x313   : > { %1046 = vsyncadd (%p886_p8), [#allocation9], 4294967168 }
 0x314 PF: > { %s25_s17 = sadd.s32 1, %s1049_s17  }
 0x315   : > { %p22_p9 = scmp.ge.s32.totalorder %s25_s17, 4  }
 0x317   :  { %24 = sbr.rel (!%p22_p9) target bundleno = 3 (0x3), region = 117 }
 0x31c   :  { %777 = vsyncpa [#allocation4], 1 }
 0x31d   :  { %779 = vsyncpa [#allocation4 + $0x1], 1 }
 0x31e   :  { %780 = vsyncpa [#allocation6], 1 }
 0x31f   :  { %781 = vsyncpa [#allocation9], 1 }

</bundles_post_ra>
